<compile_context>
chip_gen: v7x
topology: tpu7x:2x2x1
jax: 0.10.0
libtpu: 0.0.40
codegen_flags: <defaults>
</compile_context>

<pallas_src>
import functools

import jax
import jax.numpy as jnp
from jax import lax
from jax.experimental import pallas as pl
from jax.experimental.pallas import tpu as pltpu


def avgpool3x3_sub_kernel(x_ref, o_ref, *, plane_w):
    # x_ref block: (B, H, GW). Each packed row holds G planes of width
    # `plane_w` laid side by side along the lane axis (GW = G * plane_w).
    x = x_ref[...]
    _, H, GW = x.shape

    # Boundary masks built once per block, broadcast over the batch dim.
    row = lax.broadcasted_iota(jnp.int32, (1, H, GW), 1)
    col = lax.broadcasted_iota(jnp.int32, (1, H, GW), 2)
    col_in_plane = col % plane_w

    # Vertical 3-tap sum with zero padding at the top/bottom borders.
    up = jnp.where(row == 0, 0.0, jnp.roll(x, 1, axis=1))         # x[i-1, j]
    down = jnp.where(row == H - 1, 0.0, jnp.roll(x, -1, axis=1))  # x[i+1, j]
    s = x + up + down

    # Horizontal 3-tap sum with zero padding at per-plane left/right borders.
    # The per-plane masks also zero any cross-plane leakage from the roll.
    left = jnp.where(col_in_plane == 0, 0.0, jnp.roll(s, 1, axis=2))
    right = jnp.where(col_in_plane == plane_w - 1, 0.0, jnp.roll(s, -1, axis=2))
    total = s + left + right

    # count_include_pad=True (PyTorch AvgPool2d default) -> divisor always 9;
    # then subtract the constant parameter 0.307.
    o_ref[...] = (total * (1.0 / 9.0) - 0.307).astype(o_ref.dtype)


def model_forward(x):
    """x: (N, C, H, W) float32 -> (N, C, H, W) float32."""
    N, C, H, W = x.shape
    NC = N * C
    dtype = x.dtype
    itemsize = jnp.dtype(dtype).itemsize

    # ---- Lane packing: pack G planes along the lane axis so the kernel's
    # last dim is (close to) a multiple of 128.
    G = max(1, 128 // W)
    NCp = ((NC + G - 1) // G) * G          # pad plane count to a multiple of G
    xf = x.reshape(NC, H, W)
    if NCp != NC:
        xf = jnp.concatenate([xf, jnp.zeros((NCp - NC, H, W), dtype)], axis=0)
    P = NCp // G
    GW = G * W
    # (P, G, H, W) -> (P, H, G, W) -> (P, H, G*W): layout plumbing done by XLA.
    xp = xf.reshape(P, G, H, W).transpose(0, 2, 1, 3).reshape(P, H, GW)

    # ---- Batch B packed rows per grid step (amortize ~0.35 us step overhead).
    plane_bytes = H * GW * itemsize
    # ~2 MiB per buffer tile: in + out, each double-buffered -> ~8 MiB VMEM,
    # safe under v5e's 16 MiB scoped default and v7x's smaller VMEM.
    B = max(1, min(P, (2 * 1024 * 1024) // max(plane_bytes, 1)))
    if P >= 2:
        # Keep at least two parallel grid steps so both v7x TensorCores work.
        B = min(B, pl.cdiv(P, 2))
    Pp = pl.cdiv(P, B) * B
    if Pp != P:
        xp = jnp.concatenate([xp, jnp.zeros((Pp - P, H, GW), dtype)], axis=0)
    grid = (Pp // B,)

    total_elems = N * C * H * W
    cost = pl.CostEstimate(
        flops=8 * total_elems,
        transcendentals=0,
        bytes_accessed=2 * total_elems * itemsize,
    )

    out_p = pl.pallas_call(
        functools.partial(avgpool3x3_sub_kernel, plane_w=W),
        out_shape=jax.ShapeDtypeStruct((Pp, H, GW), dtype),
        grid=grid,
        in_specs=[pl.BlockSpec((B, H, GW), lambda i: (i, 0, 0))],
        out_specs=pl.BlockSpec((B, H, GW), lambda i: (i, 0, 0)),
        compiler_params=pltpu.CompilerParams(
            dimension_semantics=("parallel",)),
        cost_estimate=cost,
    )(xp)

    # ---- Undo packing / padding.
    out = out_p[:P].reshape(P, H, G, W).transpose(0, 2, 1, 3).reshape(NCp, H, W)
    return out[:NC].reshape(N, C, H, W)


def reference_forward(x):
    # Pure-JAX reference: AvgPool2d(3, stride=1, pad=1, count_include_pad=True)
    summed = lax.reduce_window(
        x, 0.0, lax.add,
        window_dimensions=(1, 1, 3, 3),
        window_strides=(1, 1, 1, 1),
        padding=((0, 0), (0, 0), (1, 1), (1, 1)),
    )
    return summed / 9.0 - 0.307


if __name__ == "__main__":
    key = jax.random.PRNGKey(0)
    x = jax.random.normal(key, (2, 4, 16, 16), dtype=jnp.float32)

    out = jax.block_until_ready(model_forward(x))

    ref = reference_forward(x)
    assert out.shape == (2, 4, 16, 16)
    assert jnp.allclose(out, ref, atol=1e-5, rtol=1e-5)

    print("KERNEL_OK")
</pallas_src>

<mosaic_0001>
module attributes {stable_mosaic.version = 11 : i64} {
  func.func @avgpool3x3_sub_kernel(%arg0: i32, %arg1: memref<1x16x128xf32, #tpu.memory_space<vmem>>, %arg2: memref<1x16x128xf32, #tpu.memory_space<vmem>>) attributes {dimension_semantics = [#tpu.dimension_semantics<parallel>], iteration_bounds = array<i64: 1>, scalar_prefetch = 0 : i64, scratch_operands = 0 : i64, tpu.core_type = #tpu.core_type<tc>, window_params = [{transform_indices = @transform_0, window_bounds = array<i64: 1, 16, 128>}, {transform_indices = @transform_1, window_bounds = array<i64: 1, 16, 128>}]} {
    %c0 = arith.constant 0 : index
    %c0_0 = arith.constant 0 : index
    %c0_1 = arith.constant 0 : index
    %0 = vector.load %arg1[%c0, %c0_0, %c0_1] : memref<1x16x128xf32, #tpu.memory_space<vmem>>, vector<1x16x128xf32>
    %1 = tpu.iota {dimensions = array<i32: 1>} : vector<1x16x128xi32>
    %2 = tpu.iota {dimensions = array<i32: 2>} : vector<1x16x128xi32>
    %c16_i32 = arith.constant 16 : i32
    %c0_i32 = arith.constant 0 : i32
    %3 = arith.cmpi eq, %c16_i32, %c0_i32 : i32
    %c1_i32 = arith.constant 1 : i32
    %4 = arith.select %3, %c1_i32, %c16_i32 : i32
    %5 = vector.broadcast %4 : i32 to vector<1x16x128xi32>
    %6 = arith.remsi %2, %5 : vector<1x16x128xi32>
    %c0_i32_2 = arith.constant 0 : i32
    %7 = vector.broadcast %c0_i32_2 : i32 to vector<1x16x128xi32>
    %8 = arith.cmpi ne, %6, %7 : vector<1x16x128xi32>
    %c0_i32_3 = arith.constant 0 : i32
    %9 = vector.broadcast %c0_i32_3 : i32 to vector<1x16x128xi32>
    %10 = arith.cmpi slt, %6, %9 : vector<1x16x128xi32>
    %c0_i32_4 = arith.constant 0 : i32
    %11 = arith.cmpi slt, %4, %c0_i32_4 : i32
    %12 = vector.broadcast %11 : i1 to vector<1x16x128xi1>
    %13 = vector.broadcast %12 : vector<1x16x128xi1> to vector<1x16x128xi1>
    %14 = arith.xori %10, %13 : vector<1x16x128xi1>
    %15 = arith.andi %14, %8 : vector<1x16x128xi1>
    %16 = vector.broadcast %4 : i32 to vector<1x16x128xi32>
    %17 = arith.addi %6, %16 : vector<1x16x128xi32>
    %18 = arith.select %15, %17, %6 : vector<1x16x128xi1>, vector<1x16x128xi32>
    %c0_i32_5 = arith.constant 0 : i32
    %19 = vector.broadcast %c0_i32_5 : i32 to vector<1x16x128xi32>
    %20 = arith.cmpi eq, %1, %19 : vector<1x16x128xi32>
    %21 = vector.extract_strided_slice %0 {offsets = [0, 15, 0], sizes = [1, 1, 128], strides = [1, 1, 1]} : vector<1x16x128xf32> to vector<1x1x128xf32>
    %22 = vector.extract_strided_slice %0 {offsets = [0, 0, 0], sizes = [1, 15, 128], strides = [1, 1, 1]} : vector<1x16x128xf32> to vector<1x15x128xf32>
    %23 = tpu.concatenate %21, %22 in 1 : vector<1x1x128xf32>, vector<1x15x128xf32> -> vector<1x16x128xf32>
    %cst = arith.constant 0.000000e+00 : f32
    %24 = vector.broadcast %cst : f32 to vector<1x16x128xf32>
    %25 = arith.select %20, %24, %23 : vector<1x16x128xi1>, vector<1x16x128xf32>
    %c15_i32 = arith.constant 15 : i32
    %26 = vector.broadcast %c15_i32 : i32 to vector<1x16x128xi32>
    %27 = arith.cmpi eq, %1, %26 : vector<1x16x128xi32>
    %28 = vector.extract_strided_slice %0 {offsets = [0, 1, 0], sizes = [1, 15, 128], strides = [1, 1, 1]} : vector<1x16x128xf32> to vector<1x15x128xf32>
    %29 = vector.extract_strided_slice %0 {offsets = [0, 0, 0], sizes = [1, 1, 128], strides = [1, 1, 1]} : vector<1x16x128xf32> to vector<1x1x128xf32>
    %30 = tpu.concatenate %28, %29 in 1 : vector<1x15x128xf32>, vector<1x1x128xf32> -> vector<1x16x128xf32>
    %cst_6 = arith.constant 0.000000e+00 : f32
    %31 = vector.broadcast %cst_6 : f32 to vector<1x16x128xf32>
    %32 = arith.select %27, %31, %30 : vector<1x16x128xi1>, vector<1x16x128xf32>
    %33 = arith.addf %0, %25 : vector<1x16x128xf32>
    %34 = arith.addf %33, %32 : vector<1x16x128xf32>
    %c0_i32_7 = arith.constant 0 : i32
    %35 = vector.broadcast %c0_i32_7 : i32 to vector<1x16x128xi32>
    %36 = arith.cmpi eq, %18, %35 : vector<1x16x128xi32>
    %37 = vector.extract_strided_slice %34 {offsets = [0, 0, 127], sizes = [1, 16, 1], strides = [1, 1, 1]} : vector<1x16x128xf32> to vector<1x16x1xf32>
    %38 = vector.extract_strided_slice %34 {offsets = [0, 0, 0], sizes = [1, 16, 127], strides = [1, 1, 1]} : vector<1x16x128xf32> to vector<1x16x127xf32>
    %39 = tpu.concatenate %37, %38 in 2 : vector<1x16x1xf32>, vector<1x16x127xf32> -> vector<1x16x128xf32>
    %cst_8 = arith.constant 0.000000e+00 : f32
    %40 = vector.broadcast %cst_8 : f32 to vector<1x16x128xf32>
    %41 = arith.select %36, %40, %39 : vector<1x16x128xi1>, vector<1x16x128xf32>
    %c15_i32_9 = arith.constant 15 : i32
    %42 = vector.broadcast %c15_i32_9 : i32 to vector<1x16x128xi32>
    %43 = arith.cmpi eq, %18, %42 : vector<1x16x128xi32>
    %44 = vector.extract_strided_slice %34 {offsets = [0, 0, 1], sizes = [1, 16, 127], strides = [1, 1, 1]} : vector<1x16x128xf32> to vector<1x16x127xf32>
    %45 = vector.extract_strided_slice %34 {offsets = [0, 0, 0], sizes = [1, 16, 1], strides = [1, 1, 1]} : vector<1x16x128xf32> to vector<1x16x1xf32>
    %46 = tpu.concatenate %44, %45 in 2 : vector<1x16x127xf32>, vector<1x16x1xf32> -> vector<1x16x128xf32>
    %cst_10 = arith.constant 0.000000e+00 : f32
    %47 = vector.broadcast %cst_10 : f32 to vector<1x16x128xf32>
    %48 = arith.select %43, %47, %46 : vector<1x16x128xi1>, vector<1x16x128xf32>
    %49 = arith.addf %34, %41 : vector<1x16x128xf32>
    %50 = arith.addf %49, %48 : vector<1x16x128xf32>
    %cst_11 = arith.constant 0.111111112 : f32
    %51 = vector.broadcast %cst_11 : f32 to vector<1x16x128xf32>
    %52 = arith.mulf %50, %51 : vector<1x16x128xf32>
    %cst_12 = arith.constant 3.070000e-01 : f32
    %53 = vector.broadcast %cst_12 : f32 to vector<1x16x128xf32>
    %54 = arith.subf %52, %53 : vector<1x16x128xf32>
    %c0_13 = arith.constant 0 : index
    %c0_14 = arith.constant 0 : index
    %c0_15 = arith.constant 0 : index
    %55 = vector.load %arg2[%c0_13, %c0_14, %c0_15] : memref<1x16x128xf32, #tpu.memory_space<vmem>>, vector<1x16x128xf32>
    tpu.vector_store %arg2[%c0_13, %c0_14, %c0_15], %54 {strides = array<i32>} : memref<1x16x128xf32, #tpu.memory_space<vmem>>, vector<1x16x128xf32>,
    return
  }
  func.func @transform_0(%arg0: i32) -> (i32, i32, i32) {
    %c0_i32 = arith.constant 0 : i32
    %c0_i32_0 = arith.constant 0 : i32
    %c0_i32_1 = arith.constant 0 : i32
    return %arg0, %c0_i32, %c0_i32_0 : i32, i32, i32
  }
  func.func @transform_1(%arg0: i32) -> (i32, i32, i32) {
    %c0_i32 = arith.constant 0 : i32
    %c0_i32_0 = arith.constant 0 : i32
    %c0_i32_1 = arith.constant 0 : i32
    return %arg0, %c0_i32, %c0_i32_0 : i32, i32, i32
  }
}

</mosaic_0001>

<bundles_post_ra>
// kernel: tpu_custom_call.1
= control target key start
LH: loop header
LB: loop body
LE: loop exit
PB: predicated region body
PF: predicated region fallthrough
CT: control target
= control target key end

     0   :  { %6 = vsyncpa [#allocation3], 0  ;;  %s221_s0 = inlined_call_operand.hbm [shape: f32[1,16,128], index: 0, kind: input, shape index: {}]   ;;  %s222_s1 = inlined_call_operand.hbm [shape: f32[1,16,128], index: 1, kind: output, shape index: {}]  }
   0x1   :  { %7 = vsyncpa [#allocation4], 0  ;;  %s175_s6 = smov [#allocation2]   ;;  %s127_s10 = scalar_lea.hbm %s221_s0, 256 }
   0x2   :  { %s13_s7 = sshll.u32 %s175_s6, 4  ;;  %p128_p0 = scmp.ne.s32.totalorder %s221_s0, %s127_s10  ;;  %s14_s7 = int_to_ptr.vmem [resolvable:$true] %s13_s7 }
   0x3   :  { %p131_p1 = scmp.lt.u32.totalorder %s127_s10, %s221_s0 }
   0x5   :  { %p133_p2 = pnand %p131_p1, %p128_p0 }
   0x7   :  { %136 = shalt.err (!%p133_p2)
}
   0x8   :  { %s137_s15 = scalar_lea.vmem %s14_s7, 256  ;;  %p142_p4 = scmp.lt.s32.totalorder %s14_s7, %s14_s7 }
   0x9   :  { %p138_p3 = scmp.ne.s32.totalorder %s14_s7, %s137_s15  ;;  %p143_p5 = scmp.lt.s32.totalorder %s137_s15, %s137_s15 }
   0xb   :  { %p144_p6 = por %p143_p5, %p142_p4 }
   0xd   :  { %p145_p7 = pnand %p144_p6, %p138_p3 }
   0xf   :  { %148 = shalt.err (!%p145_p7)
}
  0x10   :  { %s176_s16 = smov 128   ;;  %s177_s17 = smov 8  }
  0x11   :  { %19 = dma.hbm_to_vmem [thread:$0]  %s221_s0, 256, %s14_s7, [#allocation3], %s176_s16, %s176_s16, %s177_s17  }
  0x12   :  { %171 = dma.done.wait [#allocation3], 256  }
  0x13   :  { %172 = vsyncadd [#allocation3], 4294967040  ;;  %v25_v0 = vlaneseq  ;;  %v23_v3 = vld [vmem:[#allocation2] sm:$0xff]  ;;  %v24_v4 = vld [vmem:[#allocation2 + $0x8] sm:$0xff]  ;;  %vm48_vm1 = vcmask 1040384   ;;  %vm58_vm2 = vcmask 1046528  }
  0x14   :  { %v45_v5 = vrot.slane %v24_v4, 7  ;;  %v49_v6 = vrot.slane %v23_v3, 7  ;;  %v59_v7 = vrot.slane %v23_v3, 1  ;;  %v60_v8 = vrot.slane %v24_v4, 1  ;;  %s178_s0 = smov 1   ;;  %s179_s20 = smov 127  }
  0x15   :  { %v26_v1 = vshrl.u32 %v25_v0, 7  ;;  %v29_v19 = vand.u32 127, %v25_v0  ;;  %s180_s21 = smov [#allocation5]  }
  0x16   :  { %v53_v9 = vsel %vm48_vm1, %v45_v5, %v49_v6  ;;  %v50_v10 = vsel %vm48_vm1, %v49_v6, %v45_v5  ;;  %v65_v11 = vsel %vm58_vm2, %v60_v8, %v59_v7  ;;  %v61_v13 = vsel %vm58_vm2, %v59_v7, %v60_v8  ;;  %s107_s22 = sshll.u32 %s180_s21, 4  ;;  %s108_s22 = int_to_ptr.vmem [resolvable:$true] %s107_s22 }
  0x17   :  { %v27_v2 = vadd.s32 8, %v26_v1  ;;  %vm42_vm0 = vcmp.eq.s32.totalorder %v26_v1, 0  ;;  %v69_v15 = vadd.f32 %v50_v10, %v24_v4  ;;  %v34_v20 = vand.u32 15, %v29_v19  ;;  %s149_s23 = scalar_lea.vmem %s108_s22, 256  ;;  %p154_p9 = scmp.lt.s32.totalorder %s108_s22, %s108_s22 }
  0x18   :  { %v54_v12 = vsel %vm42_vm0, 0.0, %v53_v9  ;;  %p150_p8 = scmp.ne.s32.totalorder %s108_s22, %s149_s23  ;;  %p155_p10 = scmp.lt.s32.totalorder %s149_s23, %s149_s23 }
  0x19   :  { %vm57_vm3 = vcmp.eq.s32.totalorder %v27_v2, 15  ;;  %v68_v14 = vadd.f32 %v54_v12, %v23_v3  ;;  %vm72_vm4 = vcmp.eq.s32.totalorder %v34_v20, 0  ;;  %vm83_vm5 = vcmp.eq.s32.totalorder %v34_v20, 15 }
  0x1a   :  { %v67_v16 = vsel %vm57_vm3, 0.0, %v65_v11  ;;  %p156_p11 = por %p155_p10, %p154_p9 }
  0x1b   :  { %v70_v17 = vadd.f32 %v68_v14, %v61_v13  ;;  %v71_v18 = vadd.f32 %v69_v15, %v67_v16 }
  0x1c   :  { %p157_p12 = pnand %p156_p11, %p150_p8 }
  0x1d   :  { %75 = vrot.lane.b32.xlu0 %v70_v17, %s178_s0  ;;  %84 = vrot.lane.b32.xlu1 %v70_v17, %s179_s20 }
  0x21   :  { %77 = vrot.lane.b32.xlu0 %v71_v18, %s178_s0  ;;  %86 = vrot.lane.b32.xlu1 %v71_v18, %s179_s20 }
  0x8f   :  { %v76_v21 = vpop.permute.xlu0 %75  ;;  %v85_v22 = vpop.permute.xlu1 %84 }
  0x90   :  { %v81_v23 = vsel %vm72_vm4, 0.0, %v76_v21  ;;  %v90_v24 = vsel %vm83_vm5, 0.0, %v85_v22 }
  0x91   :  { %v92_v25 = vadd.f32 %v81_v23, %v70_v17 }
  0x93   :  { %v94_v26 = vadd.f32 %v92_v25, %v90_v24  ;;  %v78_v27 = vpop.permute.xlu0 %77  ;;  %v87_v28 = vpop.permute.xlu1 %86 }
  0x94   :  { %v82_v29 = vsel %vm72_vm4, 0.0, %v78_v27  ;;  %v91_v30 = vsel %vm83_vm5, 0.0, %v87_v28 }
  0x95   :  { %v96_v31 = vmul.f32 0.11111111, %v94_v26  ;;  %v93_v32 = vadd.f32 %v82_v29, %v71_v18 }
  0x97   :  { %v119_v33 = vadd.f32 -0.307, %v96_v31  ;;  %v95_v34 = vadd.f32 %v93_v32, %v91_v30 }
  0x99   :  { %100 = vst [vmem:[#allocation5] sm:$0xff] %v119_v33  ;;  %v97_v35 = vmul.f32 0.11111111, %v95_v34 }
  0x9b   :  { %v120_v36 = vadd.f32 -0.307, %v97_v35 }
  0x9d   :  { %101 = vst [vmem:[#allocation5 + $0x8] sm:$0xff] %v120_v36 }
  0x9e   :  { %160 = shalt.err (!%p157_p12)
}
  0x9f   :  { %s161_s26 = scalar_lea.hbm %s222_s1, 256 }
  0xa0   :  { %p162_p13 = scmp.ne.s32.totalorder %s222_s1, %s161_s26  ;;  %p165_p0 = scmp.lt.u32.totalorder %s161_s26, %s222_s1 }
  0xa2   :  { %p167_p1 = pnand %p165_p0, %p162_p13 }
  0xa4   :  { %170 = shalt.err (!%p167_p1)
}
  0xa5   :  { %113 = dma.vmem_to_hbm [thread:$0]  %s108_s22, 256, %s222_s1, [#allocation4], %s176_s16, %s176_s16, %s177_s17  }
  0xa6   :  { %173 = dma.done.wait [#allocation4], 256  }
  0xa7   :  { %174 = vsyncadd [#allocation4], 4294967040 }
  0xa8   :  { %117 = vsyncpa [#allocation3], 1 }
  0xa9   :  { %118 = vsyncpa [#allocation4], 1 }

</bundles_post_ra>
